<compile_context>
chip_gen: v6e
topology: v6e:2x2x1
jax: 0.10.0
libtpu: 0.0.40
codegen_flags: <defaults>
</compile_context>

<pallas_src>
import numpy as np
import jax
import jax.numpy as jnp
from jax.experimental import pallas as pl
from jax.experimental.pallas import tpu as pltpu

NT = 4        # fixed in the PyTorch module
LANE = 128


def _window_params(ntau, nt=NT):
    stride = ntau // (nt + 1)
    delta = stride // 2
    length = ntau - 2 * delta
    assert length % nt == 0, "window length must divide evenly into nt chunks"
    win = length // nt
    return delta, win


def _vmem_capacity_bytes():
    try:
        return int(pltpu.get_tpu_info().vmem_capacity_bytes)
    except Exception:
        return 128 * 1024 * 1024


def _budgets():
    cap = _vmem_capacity_bytes()
    # 64 MiB scoped limit on v5e/v6e (128 MiB physical), 32 MiB on v7x (64 MiB physical)
    vmem_limit = int(min(cap // 2, 64 * 1024 * 1024))
    target_block = int(min(4 * 1024 * 1024, vmem_limit // 8))
    return vmem_limit, target_block


def _sublane_quantum(dtype):
    return max(8, 32 // jnp.dtype(dtype).itemsize)   # 8 (f32), 16 (bf16), 32 (int8)


def _pick_tile_bc(bc, per_row_bytes, target_bytes, q):
    """BC tile: multiple of q (or == bc), sized for the block budget, and capped so
    the parallel BC axis has >=2 iterations when bc is large (v7x megacore)."""
    if bc <= q:
        return int(bc)
    cap = bc
    if bc >= 2 * q:
        cap = max(q, (bc // 2) // q * q)
    by_budget = max(q, (target_bytes // max(per_row_bytes, 1)) // q * q)
    return int(min(cap, by_budget))


def _averager_fast(x4, bc, ntau, hw, delta, win, out_dtype):
    """hw % 128 == 0 path: fetch only the ntau window, 4-D blocked indexing."""
    hw_o = hw // LANE
    itemsize = jnp.dtype(x4.dtype).itemsize
    q = _sublane_quantum(x4.dtype)
    vmem_limit, target = _budgets()

    tile_bc = _pick_tile_bc(bc, delta * hw * itemsize, target, q)

    # hw_o tile must exactly divide hw_o (hw is a reduction axis -> no ragged tiles)
    # and be a multiple of the sublane quantum, or be the full hw_o extent.
    cands = sorted({d for d in range(q, hw_o + 1, q) if hw_o % d == 0} | {hw_o})
    blk_bytes = lambda c: tile_bc * delta * c * LANE * itemsize
    fitting = [c for c in cands if blk_bytes(c) <= target]
    hw_o_tile = fitting[-1] if fitting else cands[0]
    nh = hw_o // hw_o_tile

    inv_scale = 1.0 / (win * hw)

    def kernel(x_ref, o_ref, acc_ref):
        t = pl.program_id(1)          # temporal window index (0..NT-1)
        s = pl.program_id(2)          # sub-block within the window (0 or 1)
        h = pl.program_id(3)          # hw_o tile
        nh_ = pl.num_programs(3)
        first = jnp.logical_and(s == 0, h == 0)
        last = jnp.logical_and(s == 1, h == nh_ - 1)

        @pl.when(first)
        def _():
            acc_ref[...] = jnp.zeros_like(acc_ref)

        # Hot loop: one elementwise f32 add per streamed element (pure VPU).
        acc_ref[...] += x_ref[...].astype(jnp.float32)

        @pl.when(last)
        def _():
            a = acc_ref[...]                                  # (tile_bc, delta, hw_o_tile, 128)
            a = jnp.sum(a, axis=1)                            # (tile_bc, hw_o_tile, 128)
            a = jnp.sum(a, axis=1)                            # (tile_bc, 128)
            col = (jnp.sum(a, axis=1, keepdims=True) * inv_scale).astype(o_ref.dtype)
            for tt in range(NT):                              # static column writes
                @pl.when(t == tt)
                def _(tt=tt, col=col):
                    o_ref[:, tt:tt + 1] = col

    grid = (pl.cdiv(bc, tile_bc), NT, 2, nh)
    return pl.pallas_call(
        kernel,
        out_shape=jax.ShapeDtypeStruct((bc, NT), out_dtype),
        grid=grid,
        in_specs=[pl.BlockSpec(
            (tile_bc, delta, hw_o_tile, LANE),
            lambda i, t, s, h: (i, 1 + 2 * t + s, h, 0))],
        out_specs=pl.BlockSpec((tile_bc, NT), lambda i, t, s, h: (i, 0)),
        scratch_shapes=[pltpu.VMEM((tile_bc, delta, hw_o_tile, LANE), jnp.float32)],
        compiler_params=pltpu.CompilerParams(
            dimension_semantics=("parallel", "arbitrary", "arbitrary", "arbitrary"),
            vmem_limit_bytes=vmem_limit,
        ),
    )(x4)


def _averager_fallback(x3, bc, ntau, hw, delta, win, out_dtype):
    """Generic-hw path: full (ntau, hw) trailing block per BC tile, one write per step."""
    # TODO(synk): this path still streams the 20% dead ntau rows and assumes
    # ntau*hw rows fit the VMEM budget; fine for realistic (non-128-divisible) spatial sizes.
    itemsize = jnp.dtype(x3.dtype).itemsize
    q = _sublane_quantum(x3.dtype)
    vmem_limit, target = _budgets()
    tile_bc = _pick_tile_bc(bc, ntau * hw * itemsize, target, q)
    inv_scale = 1.0 / (win * hw)

    def kernel(x_ref, o_ref):
        x = x_ref[...].astype(jnp.float32)                    # (tile_bc, ntau, hw)
        sp = jnp.sum(x, axis=-1)                              # (tile_bc, ntau)
        cols = [jnp.sum(sp[:, delta + t * win: delta + (t + 1) * win],
                        axis=1, keepdims=True) for t in range(NT)]
        o_ref[...] = (jnp.concatenate(cols, axis=1) * inv_scale).astype(o_ref.dtype)

    return pl.pallas_call(
        kernel,
        out_shape=jax.ShapeDtypeStruct((bc, NT), out_dtype),
        grid=(pl.cdiv(bc, tile_bc),),
        in_specs=[pl.BlockSpec((tile_bc, ntau, hw), lambda i: (i, 0, 0))],
        out_specs=pl.BlockSpec((tile_bc, NT), lambda i: (i, 0)),
        compiler_params=pltpu.CompilerParams(
            dimension_semantics=("parallel",),
            vmem_limit_bytes=vmem_limit,
        ),
    )(x3)


def averager(x):
    """Pallas equivalent of Averager.forward for a plain-tensor input (ny == 1)."""
    # TODO(synk): tuple input path (ny > 1, per-frame shifted windows) not implemented;
    # it would add extra output columns with shifted windows of the same structure.
    if x.ndim == 4:
        x = x[None]          # matches X.unsqueeze(0)
    assert x.ndim == 5
    B, C, ntau, H, W = x.shape
    assert ntau in (10, 20, 40, 80), "X.shape[2] must be 10 x a power of 2"

    delta, win = _window_params(ntau)
    assert win == 2 * delta and NT * win == ntau - 2 * delta
    bc, hw = B * C, H * W

    if hw % LANE == 0:
        # Free (bitcast) reshape; only window rows are ever DMA'd from HBM.
        x4 = x.reshape(bc, ntau, hw // LANE, LANE)
        out = _averager_fast(x4, bc, ntau, hw, delta, win, x.dtype)
    else:
        out = _averager_fallback(x.reshape(bc, ntau, hw), bc, ntau, hw, delta, win, x.dtype)

    return out.reshape(B, C * NT)


def _reference(x):
    """Pure-JAX transcription of the PyTorch forward (ny == 1 path)."""
    if x.ndim == 4:
        x = x[None]
    B, C, ntau, H, W = x.shape
    delta, _ = _window_params(ntau)
    x_ = x.astype(jnp.float32).mean(axis=(3, 4))
    sl = x_[:, :, delta:ntau - delta]
    return sl.reshape(B, C, NT, -1).mean(axis=3).reshape(B, -1)


def _check(x, rtol=1e-5, atol=1e-5):
    out = jax.block_until_ready(averager(x))
    ref = _reference(x)
    assert out.shape == ref.shape, f"bad output shape {out.shape} vs {ref.shape}"
    np.testing.assert_allclose(np.asarray(out), np.asarray(ref), rtol=rtol, atol=atol)


if __name__ == "__main__":
    key = jax.random.PRNGKey(0)

    # 5-D path, fast (hw % 128 == 0): B=2, C=4, ntau=20, H=W=16
    _check(jax.random.normal(key, (2, 4, 20, 16, 16), dtype=jnp.float32))

    # 4-D path (unsqueeze) with larger spatial extent: ntau=20, H=W=64
    _check(jax.random.normal(jax.random.PRNGKey(1), (4, 20, 64, 64), dtype=jnp.float32))

    # Multi-BC-tile with ragged tail (bc = 21, no padding), ntau=10 (delta=1)
    _check(jax.random.normal(jax.random.PRNGKey(2), (3, 7, 10, 16, 16), dtype=jnp.float32))

    # Fallback path: hw = 100 (not a multiple of 128), ntau=40
    _check(jax.random.normal(jax.random.PRNGKey(3), (2, 3, 40, 10, 10), dtype=jnp.float32))

    print("KERNEL_OK")
</pallas_src>

<mosaic_0001>
module attributes {stable_mosaic.version = 11 : i64} {
  func.func @kernel(%arg0: i32, %arg1: i32, %arg2: i32, %arg3: i32, %arg4: memref<8x2x2x128xf32, #tpu.memory_space<vmem>>, %arg5: memref<8x4xf32, #tpu.memory_space<vmem>>, %arg6: memref<8x2x2x128xf32, #tpu.memory_space<vmem>>) attributes {dimension_semantics = [#tpu.dimension_semantics<parallel>, #tpu.dimension_semantics<arbitrary>, #tpu.dimension_semantics<arbitrary>, #tpu.dimension_semantics<arbitrary>], iteration_bounds = array<i64: 1, 4, 2, 1>, scalar_prefetch = 0 : i64, scratch_operands = 1 : i64, tpu.core_type = #tpu.core_type<tc>, window_params = [{transform_indices = @transform_0, window_bounds = array<i64: 8, 2, 2, 128>}, {transform_indices = @transform_1, window_bounds = array<i64: 8, 4>}]} {
    %c0_i32 = arith.constant 0 : i32
    %0 = arith.cmpi eq, %arg2, %c0_i32 : i32
    %c0_i32_0 = arith.constant 0 : i32
    %1 = arith.cmpi eq, %arg3, %c0_i32_0 : i32
    %2 = arith.andi %0, %1 : i1
    %c1_i32 = arith.constant 1 : i32
    %3 = arith.cmpi eq, %arg2, %c1_i32 : i32
    %c0_i32_1 = arith.constant 0 : i32
    %4 = arith.cmpi eq, %arg3, %c0_i32_1 : i32
    %5 = arith.andi %3, %4 : i1
    %6 = arith.extui %2 : i1 to i32
    %c0_i32_2 = arith.constant 0 : i32
    %7 = arith.cmpi ne, %6, %c0_i32_2 : i32
    scf.if %7 {
      %cst = arith.constant 0.000000e+00 : f32
      %14 = vector.broadcast %cst : f32 to vector<8x2x2x128xf32>
      %c0_15 = arith.constant 0 : index
      %c0_16 = arith.constant 0 : index
      %c0_17 = arith.constant 0 : index
      %c0_18 = arith.constant 0 : index
      %15 = vector.load %arg6[%c0_15, %c0_16, %c0_17, %c0_18] : memref<8x2x2x128xf32, #tpu.memory_space<vmem>>, vector<8x2x2x128xf32>
      tpu.vector_store %arg6[%c0_15, %c0_16, %c0_17, %c0_18], %14 {strides = array<i32>} : memref<8x2x2x128xf32, #tpu.memory_space<vmem>>, vector<8x2x2x128xf32>,
    } else {
    }
    %c0 = arith.constant 0 : index
    %c0_3 = arith.constant 0 : index
    %c0_4 = arith.constant 0 : index
    %c0_5 = arith.constant 0 : index
    %8 = vector.load %arg6[%c0, %c0_3, %c0_4, %c0_5] : memref<8x2x2x128xf32, #tpu.memory_space<vmem>>, vector<8x2x2x128xf32>
    %c0_6 = arith.constant 0 : index
    %c0_7 = arith.constant 0 : index
    %c0_8 = arith.constant 0 : index
    %c0_9 = arith.constant 0 : index
    %9 = vector.load %arg4[%c0_6, %c0_7, %c0_8, %c0_9] : memref<8x2x2x128xf32, #tpu.memory_space<vmem>>, vector<8x2x2x128xf32>
    %10 = arith.addf %8, %9 : vector<8x2x2x128xf32>
    %c0_10 = arith.constant 0 : index
    %c0_11 = arith.constant 0 : index
    %c0_12 = arith.constant 0 : index
    %c0_13 = arith.constant 0 : index
    %11 = vector.load %arg6[%c0_10, %c0_11, %c0_12, %c0_13] : memref<8x2x2x128xf32, #tpu.memory_space<vmem>>, vector<8x2x2x128xf32>
    tpu.vector_store %arg6[%c0_10, %c0_11, %c0_12, %c0_13], %10 {strides = array<i32>} : memref<8x2x2x128xf32, #tpu.memory_space<vmem>>, vector<8x2x2x128xf32>,
    %12 = arith.extui %5 : i1 to i32
    %c0_i32_14 = arith.constant 0 : i32
    %13 = arith.cmpi ne, %12, %c0_i32_14 : i32
    scf.if %13 {
      %c0_15 = arith.constant 0 : index
      %c0_16 = arith.constant 0 : index
      %c0_17 = arith.constant 0 : index
      %c0_18 = arith.constant 0 : index
      %14 = vector.load %arg6[%c0_15, %c0_16, %c0_17, %c0_18] : memref<8x2x2x128xf32, #tpu.memory_space<vmem>>, vector<8x2x2x128xf32>
      %cst = arith.constant dense<0.000000e+00> : vector<8x2x128xf32>
      %15 = vector.multi_reduction <add>, %14, %cst [1] : vector<8x2x2x128xf32> to vector<8x2x128xf32>
      %cst_19 = arith.constant dense<0.000000e+00> : vector<8x128xf32>
      %16 = vector.multi_reduction <add>, %15, %cst_19 [1] : vector<8x2x128xf32> to vector<8x128xf32>
      %cst_20 = arith.constant dense<0.000000e+00> : vector<8xf32>
      %17 = vector.multi_reduction <add>, %16, %cst_20 [1] : vector<8x128xf32> to vector<8xf32>
      %18 = vector.shape_cast %17 : vector<8xf32> to vector<8x1xf32>
      %cst_21 = arith.constant 9.765625E-4 : f32
      %19 = vector.broadcast %cst_21 : f32 to vector<8x1xf32>
      %20 = arith.mulf %18, %19 : vector<8x1xf32>
      %c0_i32_22 = arith.constant 0 : i32
      %21 = arith.cmpi eq, %arg1, %c0_i32_22 : i32
      %22 = arith.extui %21 : i1 to i32
      %c0_i32_23 = arith.constant 0 : i32
      %23 = arith.cmpi ne, %22, %c0_i32_23 : i32
      scf.if %23 {
        %c0_28 = arith.constant 0 : index
        %c0_29 = arith.constant 0 : index
        %33 = vector.load %arg5[%c0_28, %c0_29] : memref<8x4xf32, #tpu.memory_space<vmem>>, vector<8x1xf32>
        tpu.vector_store %arg5[%c0_28, %c0_29], %20 {strides = array<i32>} : memref<8x4xf32, #tpu.memory_space<vmem>>, vector<8x1xf32>,
      } else {
      }
      %c1_i32_24 = arith.constant 1 : i32
      %24 = arith.cmpi eq, %arg1, %c1_i32_24 : i32
      %25 = arith.extui %24 : i1 to i32
      %c0_i32_25 = arith.constant 0 : i32
      %26 = arith.cmpi ne, %25, %c0_i32_25 : i32
      scf.if %26 {
        %c0_28 = arith.constant 0 : index
        %c1 = arith.constant 1 : index
        %33 = vector.load %arg5[%c0_28, %c1] : memref<8x4xf32, #tpu.memory_space<vmem>>, vector<8x1xf32>
        tpu.vector_store %arg5[%c0_28, %c1], %20 {strides = array<i32>} : memref<8x4xf32, #tpu.memory_space<vmem>>, vector<8x1xf32>,
      } else {
      }
      %c2_i32 = arith.constant 2 : i32
      %27 = arith.cmpi eq, %arg1, %c2_i32 : i32
      %28 = arith.extui %27 : i1 to i32
      %c0_i32_26 = arith.constant 0 : i32
      %29 = arith.cmpi ne, %28, %c0_i32_26 : i32
      scf.if %29 {
        %c0_28 = arith.constant 0 : index
        %c2 = arith.constant 2 : index
        %33 = vector.load %arg5[%c0_28, %c2] : memref<8x4xf32, #tpu.memory_space<vmem>>, vector<8x1xf32>
        tpu.vector_store %arg5[%c0_28, %c2], %20 {strides = array<i32>} : memref<8x4xf32, #tpu.memory_space<vmem>>, vector<8x1xf32>,
      } else {
      }
      %c3_i32 = arith.constant 3 : i32
      %30 = arith.cmpi eq, %arg1, %c3_i32 : i32
      %31 = arith.extui %30 : i1 to i32
      %c0_i32_27 = arith.constant 0 : i32
      %32 = arith.cmpi ne, %31, %c0_i32_27 : i32
      scf.if %32 {
        %c0_28 = arith.constant 0 : index
        %c3 = arith.constant 3 : index
        %33 = vector.load %arg5[%c0_28, %c3] : memref<8x4xf32, #tpu.memory_space<vmem>>, vector<8x1xf32>
        tpu.vector_store %arg5[%c0_28, %c3], %20 {strides = array<i32>} : memref<8x4xf32, #tpu.memory_space<vmem>>, vector<8x1xf32>,
      } else {
      }
    } else {
    }
    return
  }
  func.func @transform_0(%arg0: i32, %arg1: i32, %arg2: i32, %arg3: i32) -> (i32, i32, i32, i32) {
    %c2_i32 = arith.constant 2 : i32
    %0 = arith.muli %c2_i32, %arg1 : i32
    %c1_i32 = arith.constant 1 : i32
    %1 = arith.addi %c1_i32, %0 : i32
    %2 = arith.addi %1, %arg2 : i32
    %c0_i32 = arith.constant 0 : i32
    %c0_i32_0 = arith.constant 0 : i32
    return %arg0, %2, %arg3, %c0_i32 : i32, i32, i32, i32
  }
  func.func @transform_1(%arg0: i32, %arg1: i32, %arg2: i32, %arg3: i32) -> (i32, i32) {
    %c0_i32 = arith.constant 0 : i32
    %c0_i32_0 = arith.constant 0 : i32
    return %arg0, %c0_i32 : i32, i32
  }
}

</mosaic_0001>

<bundles_post_ra>
// kernel: tpu_custom_call.1
= control target key start
LH: loop header
LB: loop body
LE: loop exit
PB: predicated region body
PF: predicated region fallthrough
CT: control target
= control target key end

     0   :  { %6 = vsyncpa [#allocation4], 0  ;;  %s903_s0 = inlined_call_operand.hbm [shape: f32[8,20,2,128], index: 0, kind: input, shape index: {}]   ;;  %s904_s1 = inlined_call_operand.vmem [shape: f32[8,4], index: 1, kind: output, shape index: {}]  }
   0x1   :  { %8 = vsyncpa [#allocation4 + $0x1], 0  ;;  %s720_s6 = smov 0   ;;  %s722_s7 = smov 0  }
   0x2   :  { %s724_s8 = smov 0   ;;  %s726_s9 = smov 0  }
   0x3   :  { %s728_s10 = smov 0   ;;  %s730_s11 = smov 0  }
   0x4   :  { %s732_s12 = smov 0   ;;  %s734_s13 = smov 0  }
   0x5 LB: > { %s32_s14 = sadd.s32 1, %s694_s11  ;;  %s36_s15 = sadd.s32 1, %s698_s12  ;;  %s702_s13 = sphi %s734_s13, %s14_s13   ;;  %s698_s12 = sphi %s732_s12, %s913_s12   ;;  %s694_s11 = sphi %s730_s11, %s912_s11   ;;  %s690_s10 = sphi %s728_s10, %s911_s10   ;;  %s686_s9 = sphi %s726_s9, %s910_s9   ;;  %s682_s8 = sphi %s724_s8, %s909_s8   ;;  %s678_s7 = sphi %s722_s7, %s908_s7   ;;  %s674_s6 = sphi %s720_s6, %s907_s6  }
   0x6   : > { %p34_p0 = scmp.ge.s32.totalorder %s32_s14, 2  ;;  %s533_s16 = sshll.u32 %s698_s12, 1 }
   0x7   : > { %s532_s17 = sadd.s32 4294967295, %s702_s13   ;;  %p64_p1 = scmp.ne.s32.totalorder %s682_s8, %s678_s7 }
   0x8   : > { %s915_s14 = smov (%p34_p0, %s32_s14), 0  ;;  %s917_s15 = smov (!%p34_p0, %s36_s15), %s698_s12 }
   0x9   : > { %p38_p2 = scmp.ge.s32.totalorder %s917_s15, 4  ;;  %s45_s18 = sadd.s32 1, %s533_s16 }
   0xa   : > { %p65_p3 = scmp.eq.s32.totalorder %s702_s13, 0  ;;  %p70_p4 = scmp.ne.s32.totalorder %s678_s7, %s674_s6 }
   0xb   : > { %s919_s15 = smov (%p38_p2, %s917_s15), 0  ;;  %p71_p6 = scmp.eq.s32.totalorder %s532_s17, 0 }
   0xc   : > { %p771_p5 = por %p65_p3, %p64_p1  ;;  %s46_s20 = sadd.s32 %s694_s11, %s45_s18 }
   0xd   : > { %s534_s21 = sshll.u32 %s919_s15, 1  ;;  %p777_p7 = por %p71_p6, %p70_p4 }
   0xe   : > { %s48_s22 = sadd.s32 1, %s534_s21  ;;  %s57_s26 = sadd.s32 1, %s682_s8 }
   0xf   : > { %s49_s24 = sadd.s32 %s48_s22, %s915_s14  ;;  %p536_p9 = scmp.ge.s32.totalorder %s702_s13, 8 }
  0x10   : > { %s51_s25 = ssub.s32 %s46_s20, %s49_s24 }
  0x11   : > { %p55_p8 = scmp.eq.s32.totalorder %s51_s25, 0  ;;  %116 = sbr.rel (%p536_p9) target bundleno = 37 (0x25), region = 16 }
  0x13   : > { %s784_s27 = scalar_select %p55_p8, %s682_s8, %s57_s26  }
  0x16   : > { %s120_s28 = sand.u32 1, %s682_s8   ;;  %s472_s29 = sadd.s32 %s694_s11, %s533_s16 }
  0x17   : > { %s537_s30 = sshll.u32 %s120_s28, 5  ;;  %s554_s2 = sshll.u32 %s472_s29, 6 }
  0x18   : > { %s478_s5 = scalar_lea.hbm %s903_s0, %s554_s2  ;;  %s124_s6 = scalar_lea.vmem [#allocation3], %s537_s30 }
  0x19   : > { %s150_s17 = sshll.u32 %s124_s6, 4  ;;  %s704_s21 = smov 640   ;;  %s151_s17 = int_to_ptr.vmem [resolvable:$true] %s150_s17 }
  0x1a   : > { %s557_s18 = scalar_select %p771_p5, [#allocation0], [#allocation7] }
  0x1b   : > { %558 = sst [smem:[#allocation6]] (%p771_p5), %s704_s21  ;;  %s705_s22 = smov 64  }
  0x1c   : > { %s142_s20 = sld [smem:[%s557_s18]]   ;;  %s479_s16 = scalar_lea.hbm %s478_s5, 64 }
  0x1d   : > { %559 = sst [smem:[#allocation6 + $0x1]] (%p771_p5), %s705_s22  ;;  %s706_s24 = smov 2  }
  0x1e   : > { %560 = sst [smem:[#allocation6 + $0x2]] (%p771_p5), %s706_s24  ;;  %s707_s25 = smov 32  }
  0x1f   : > { %561 = sst [smem:[#allocation6 + $0x3]] (%p771_p5), %s707_s25  ;;  %s121_s30 = scalar_lea.sflag [#allocation4], %s120_s28 }
  0x20   : > { %562 = sst [smem:[#allocation6 + $0x4]] (%p771_p5), %s707_s25  ;;  %s708_s2 = smov 131072  }
  0x21   : > { %563 = sst [smem:[#allocation6 + $0x5]] (%p771_p5), %s706_s24 }
  0x22   : > { %s541_s26 = sshll.u32 %s142_s20, 26 }
  0x23   : > { %s542_s29 = sadd.s32 134217728, %s541_s26 }
  0x24   : > { %564 = dma.general (%p771_p5), %s479_s16, 512, %s151_s17, %s121_s30, %s708_s2, [#allocation6], %s542_s29, 0  }
  0x25 PF: > { %p543_p10 = scmp.ge.s32.totalorder %s702_s13, 1  ;;  %p171_p11 = scmp.lt.s32.totalorder %s702_s13, 9 }
  0x27   : > { %p172_p12 = pnand %p543_p10, %p171_p11 }
  0x28   : > { %s177_s3 = sand.u32 (!%p172_p12), 1, %s678_s7  }
  0x29   : > { %175 = sbr.rel (%p172_p12) target bundleno = 272 (0x110), region = 24  ;;  %s544_s4 = sshll.u32 (!%p172_p12), %s177_s3, 5 }
  0x2a   : > { %s178_s5 = scalar_lea.sflag (!%p172_p12), [#allocation4], %s177_s3  ;;  %s811_s6 = scalar_lea.vmem (!%p172_p12), [#allocation3], %s544_s4 }
  0x2e   : > { %669 = dma.done.wait (%p777_p7), %s178_s5, 512  }
  0x2f   : > { %671 = vsyncadd (%p777_p7), %s178_s5, 4294966784  ;;  %p208_p13 = scmp.eq.s32.totalorder %s686_s9, 0  ;;  %p212_p0 = scmp.eq.s32.totalorder %s686_s9, 1 }
  0x30   : > { %v709_v0 = vmov (%p208_p13), 0.0  }
  0x31   : > { %216 = sbr.rel (!%p208_p13) target bundleno = 57 (0x39), region = 32  ;;  %217 = vst [vmem:[#allocation2] sm:$0x3] (%p208_p13), %v709_v0  ;;  %218 = vst [vmem:[#allocation2 + $0x2] sm:$0x3] (%p208_p13), %v709_v0 }
  0x32   : > { %219 = vst [vmem:[#allocation2 + $0x4] sm:$0x3] (%p208_p13), %v709_v0  ;;  %220 = vst [vmem:[#allocation2 + $0x6] sm:$0x3] (%p208_p13), %v709_v0 }
  0x33   : > { %221 = vst [vmem:[#allocation2 + $0x8] sm:$0x3] (%p208_p13), %v709_v0  ;;  %222 = vst [vmem:[#allocation2 + $0xa] sm:$0x3] (%p208_p13), %v709_v0 }
  0x34   : > { %223 = vst [vmem:[#allocation2 + $0xc] sm:$0x3] (%p208_p13), %v709_v0  ;;  %224 = vst [vmem:[#allocation2 + $0xe] sm:$0x3] (%p208_p13), %v709_v0 }
  0x35   : > { %225 = vst [vmem:[#allocation2 + $0x10] sm:$0x3] (%p208_p13), %v709_v0  ;;  %226 = vst [vmem:[#allocation2 + $0x12] sm:$0x3] (%p208_p13), %v709_v0 }
  0x36   : > { %227 = vst [vmem:[#allocation2 + $0x14] sm:$0x3] %v709_v0  ;;  %228 = vst [vmem:[#allocation2 + $0x16] sm:$0x3] %v709_v0 }
  0x37   : > { %229 = vst [vmem:[#allocation2 + $0x18] sm:$0x3] %v709_v0  ;;  %230 = vst [vmem:[#allocation2 + $0x1a] sm:$0x3] %v709_v0 }
  0x38   : > { %231 = vst [vmem:[#allocation2 + $0x1c] sm:$0x3] %v709_v0  ;;  %232 = vst [vmem:[#allocation2 + $0x1e] sm:$0x3] %v709_v0 }
  0x39 PF: > { %v249_v2 = vld [vmem:[%s811_s6] sm:$0x3]  ;;  %v250_v5 = vld [vmem:[%s811_s6 + $0x2] sm:$0x3]  ;;  %v251_v7 = vld [vmem:[%s811_s6 + $0x4] sm:$0x3] }
  0x3a   : > { %v252_v11 = vld [vmem:[%s811_s6 + $0x6] sm:$0x3]  ;;  %v253_v14 = vld [vmem:[%s811_s6 + $0x8] sm:$0x3]  ;;  %v254_v16 = vld [vmem:[%s811_s6 + $0xa] sm:$0x3] }
  0x3b   : > { %v233_v1 = vld [vmem:[#allocation2] sm:$0x3]  ;;  %v234_v3 = vld [vmem:[#allocation2 + $0x2] sm:$0x3]  ;;  %v255_v20 = vld [vmem:[%s811_s6 + $0xc] sm:$0x3] }
  0x3c   : > { %v265_v4 = vadd.f32 %v249_v2, %v233_v1  ;;  %v235_v6 = vld [vmem:[#allocation2 + $0x4] sm:$0x3]  ;;  %v266_v8 = vadd.f32 %v250_v5, %v234_v3  ;;  %v236_v10 = vld [vmem:[#allocation2 + $0x6] sm:$0x3]  ;;  %v256_v23 = vld [vmem:[%s811_s6 + $0xe] sm:$0x3] }
  0x3d   : > { %v267_v9 = vadd.f32 %v251_v7, %v235_v6  ;;  %v237_v12 = vld [vmem:[#allocation2 + $0x8] sm:$0x3]  ;;  %v268_v13 = vadd.f32 %v252_v11, %v236_v10  ;;  %v238_v15 = vld [vmem:[#allocation2 + $0xa] sm:$0x3]  ;;  %v257_v25 = vld [vmem:[%s811_s6 + $0x10] sm:$0x3] }
  0x3e   : > { %281 = vst [vmem:[#allocation2] sm:$0x3] %v265_v4  ;;  %282 = vst [vmem:[#allocation2 + $0x2] sm:$0x3] %v266_v8  ;;  %v269_v17 = vadd.f32 %v253_v14, %v237_v12  ;;  %v270_v18 = vadd.f32 %v254_v16, %v238_v15  ;;  %v239_v19 = vld [vmem:[#allocation2 + $0xc] sm:$0x3] }
  0x3f   : > { %283 = vst [vmem:[#allocation2 + $0x4] sm:$0x3] %v267_v9  ;;  %v240_v21 = vld [vmem:[#allocation2 + $0xe] sm:$0x3]  ;;  %284 = vst [vmem:[#allocation2 + $0x6] sm:$0x3] %v268_v13  ;;  %v271_v22 = vadd.f32 %v255_v20, %v239_v19 }
  0x40   : > { %v241_v24 = vld [vmem:[#allocation2 + $0x10] sm:$0x3]  ;;  %285 = vst [vmem:[#allocation2 + $0x8] sm:$0x3] %v269_v17  ;;  %286 = vst [vmem:[#allocation2 + $0xa] sm:$0x3] %v270_v18  ;;  %v272_v26 = vadd.f32 %v256_v23, %v240_v21 }
  0x41   : > { %v273_v27 = vadd.f32 %v257_v25, %v241_v24  ;;  %v242_v28 = vld [vmem:[#allocation2 + $0x12] sm:$0x3]  ;;  %v243_v30 = vld [vmem:[#allocation2 + $0x14] sm:$0x3]  ;;  %287 = vst [vmem:[#allocation2 + $0xc] sm:$0x3] %v271_v22 }
  0x42   : > { %v258_v29 = vld [vmem:[%s811_s6 + $0x12] sm:$0x3]  ;;  %v259_v32 = vld [vmem:[%s811_s6 + $0x14] sm:$0x3]  ;;  %v244_v33 = vld [vmem:[#allocation2 + $0x16] sm:$0x3] }
  0x43   : > { %v274_v31 = vadd.f32 %v258_v29, %v242_v28  ;;  %v260_v34 = vld [vmem:[%s811_s6 + $0x16] sm:$0x3]  ;;  %288 = vst [vmem:[#allocation2 + $0xe] sm:$0x3] %v272_v26  ;;  %289 = vst [vmem:[#allocation2 + $0x10] sm:$0x3] %v273_v27  ;;  %v275_v35 = vadd.f32 %v259_v32, %v243_v30 }
  0x44   : > { %v276_v36 = vadd.f32 %v260_v34, %v244_v33  ;;  %v245_v37 = vld [vmem:[#allocation2 + $0x18] sm:$0x3]  ;;  %v246_v39 = vld [vmem:[#allocation2 + $0x1a] sm:$0x3]  ;;  %v247_v42 = vld [vmem:[#allocation2 + $0x1c] sm:$0x3] }
  0x45   : > { %v261_v38 = vld [vmem:[%s811_s6 + $0x18] sm:$0x3]  ;;  %290 = vst [vmem:[#allocation2 + $0x12] sm:$0x3] %v274_v31  ;;  %v262_v41 = vld [vmem:[%s811_s6 + $0x1a] sm:$0x3] }
  0x46   : > { %v277_v40 = vadd.f32 %v261_v38, %v245_v37  ;;  %v263_v43 = vld [vmem:[%s811_s6 + $0x1c] sm:$0x3]  ;;  %291 = vst [vmem:[#allocation2 + $0x14] sm:$0x3] %v275_v35  ;;  %292 = vst [vmem:[#allocation2 + $0x16] sm:$0x3] %v276_v36  ;;  %v278_v44 = vadd.f32 %v262_v41, %v246_v39 }
  0x47   : > { %v279_v45 = vadd.f32 %v263_v43, %v247_v42  ;;  %v248_v46 = vld [vmem:[#allocation2 + $0x1e] sm:$0x3]  ;;  %298 = sbr.rel (!%p212_p0) target bundleno = 272 (0x110), region = 36  ;;  %v299_v49 = vld [vmem:[#allocation2] sm:$0x3] (%p212_p0)  ;;  %vm315_vm0 = vcmask (%p212_p0), 1041408  }
  0x48   : > { %v264_v47 = vld [vmem:[%s811_s6 + $0x1e] sm:$0x3]  ;;  %293 = vst [vmem:[#allocation2 + $0x18] sm:$0x3] %v277_v40  ;;  %294 = vst [vmem:[#allocation2 + $0x1a] sm:$0x3] %v278_v44 }
  0x49   : > { %v280_v48 = vadd.f32 %v264_v47, %v248_v46  ;;  %295 = vst [vmem:[#allocation2 + $0x1c] sm:$0x3] %v279_v45  ;;  %v300_v50 = vld [vmem:[#allocation2 + $0x2] sm:$0x3] (%p212_p0)  ;;  %v301_v51 = vld [vmem:[#allocation2 + $0x4] sm:$0x3] (%p212_p0) }
  0x4a   : > { %v302_v52 = vld [vmem:[#allocation2 + $0x6] sm:$0x3] (%p212_p0)  ;;  %v303_v53 = vld [vmem:[#allocation2 + $0x8] sm:$0x3] (%p212_p0)  ;;  %v304_v54 = vld [vmem:[#allocation2 + $0xa] sm:$0x3] (%p212_p0) }
  0x4b   : > { %296 = vst [vmem:[#allocation2 + $0x1e] sm:$0x3] %v280_v48  ;;  %v305_v55 = vld [vmem:[#allocation2 + $0xc] sm:$0x3] (%p212_p0)  ;;  %v306_v56 = vld [vmem:[#allocation2 + $0xe] sm:$0x3] (%p212_p0) }
  0x4c   : > { %v307_v57 = vld [vmem:[#allocation2 + $0x10] sm:$0x3]  ;;  %v308_v58 = vld [vmem:[#allocation2 + $0x12] sm:$0x3]  ;;  %v316_v62 = vsel %vm315_vm0, %v299_v49, 0.0  ;;  %v317_v63 = vsel %vm315_vm0, %v300_v50, 0.0 }
  0x4d   : > { %v309_v59 = vld [vmem:[#allocation2 + $0x14] sm:$0x3]  ;;  %v310_v60 = vld [vmem:[#allocation2 + $0x16] sm:$0x3]  ;;  %v319_v0 = vsel %vm315_vm0, %v301_v51, 0.0  ;;  %v320_v1 = vsel %vm315_vm0, %v302_v52, 0.0  ;;  %v318_v4 = vadd.f32 %v317_v63, %v316_v62 }
  0x4e   : > { %v321_v5 = vadd.f32 %v320_v1, %v319_v0  ;;  %v322_v6 = vsel %vm315_vm0, %v303_v53, 0.0  ;;  %v323_v7 = vsel %vm315_vm0, %v304_v54, 0.0  ;;  %v325_v10 = vsel %vm315_vm0, %v305_v55, 0.0  ;;  %p547_p1 = scmp.ne.s32.totalorder %s690_s10, 0 }
  0x4f   : > { %v311_v61 = vld [vmem:[#allocation2 + $0x18] sm:$0x3]  ;;  %v312_v2 = vld [vmem:[#allocation2 + $0x1a] sm:$0x3]  ;;  %v324_v9 = vadd.f32 %v323_v7, %v322_v6  ;;  %v326_v11 = vsel %vm315_vm0, %v306_v56, 0.0  ;;  %v328_v12 = vsel %vm315_vm0, %v307_v57, 0.0 }
  0x50   : > { %v313_v3 = vld [vmem:[#allocation2 + $0x1c] sm:$0x3]  ;;  %v327_v13 = vadd.f32 %v326_v11, %v325_v10  ;;  %v329_v14 = vsel %vm315_vm0, %v308_v58, 0.0  ;;  %v331_v15 = vsel %vm315_vm0, %v309_v59, 0.0  ;;  %v332_v16 = vsel %vm315_vm0, %v310_v60, 0.0 }
  0x51   : > { %v330_v17 = vadd.f32 %v329_v14, %v328_v12  ;;  %v333_v18 = vadd.f32 %v332_v16, %v331_v15  ;;  %v334_v19 = vsel %vm315_vm0, %v311_v61, 0.0  ;;  %v335_v20 = vsel %vm315_vm0, %v312_v2, 0.0 }
  0x52   : > { %v314_v8 = vld [vmem:[#allocation2 + $0x1e] sm:$0x3]  ;;  %v336_v21 = vadd.f32 %v335_v20, %v334_v19  ;;  %v337_v22 = vsel %vm315_vm0, %v313_v3, 0.0  ;;  %v340_v24 = vsel %vm315_vm0, %v318_v4, 0.0  ;;  %v347_v27 = vsel %vm315_vm0, %v321_v5, 0.0 }
  0x53   : > { %v338_v23 = vsel %vm315_vm0, %v314_v8, 0.0  ;;  %v341_v26 = vrot.slane %v340_v24, 4  ;;  %v354_v28 = vsel %vm315_vm0, %v324_v9, 0.0  ;;  %v348_v29 = vrot.slane %v347_v27, 4 }
  0x54   : > { %v339_v25 = vadd.f32 %v338_v23, %v337_v22  ;;  %v355_v30 = vrot.slane %v354_v28, 4  ;;  %v361_v31 = vsel %vm315_vm0, %v327_v13, 0.0  ;;  %v368_v32 = vsel %vm315_vm0, %v330_v17, 0.0 }
  0x55   : > { %v342_v33 = vadd.f32 %v341_v26, %v340_v24  ;;  %v362_v34 = vrot.slane %v361_v31, 4  ;;  %v369_v35 = vrot.slane %v368_v32, 4  ;;  %v375_v36 = vsel %vm315_vm0, %v333_v18, 0.0 }
  0x56   : > { %vm404_vm1 = vcmask 1041409   ;;  %v349_v37 = vadd.f32 %v348_v29, %v347_v27  ;;  %v356_v38 = vadd.f32 %v355_v30, %v354_v28  ;;  %v376_v39 = vrot.slane %v375_v36, 4 }
  0x57   : > { %v382_v40 = vsel %vm315_vm0, %v336_v21, 0.0  ;;  %vm406_vm2 = vcmask 1042434   ;;  %v343_v41 = vrot.slane %v342_v33, 2  ;;  %v363_v42 = vadd.f32 %v362_v34, %v361_v31 }
  0x58   : > { %v370_v43 = vadd.f32 %v369_v35, %v368_v32  ;;  %v383_v44 = vrot.slane %v382_v40, 4  ;;  %v350_v45 = vrot.slane %v349_v37, 2  ;;  %v357_v46 = vrot.slane %v356_v38, 2 }
  0x59   : > { %v377_v47 = vadd.f32 %v376_v39, %v375_v36  ;;  %v389_v48 = vsel %vm315_vm0, %v339_v25, 0.0  ;;  %v344_v49 = vadd.f32 %v343_v41, %v342_v33  ;;  %v364_v50 = vrot.slane %v363_v42, 2 }
  0x5a   : > { %v371_v51 = vrot.slane %v370_v43, 2  ;;  %v384_v52 = vadd.f32 %v383_v44, %v382_v40  ;;  %v351_v53 = vadd.f32 %v350_v45, %v349_v37  ;;  %v358_v54 = vadd.f32 %v357_v46, %v356_v38 }
  0x5b   : > { %v378_v55 = vrot.slane %v377_v47, 2  ;;  %v390_v56 = vrot.slane %v389_v48, 4  ;;  %v345_v57 = vrot.slane %v344_v49, 1  ;;  %v365_v58 = vadd.f32 %v364_v50, %v363_v42 }
  0x5c   : > { %v372_v59 = vadd.f32 %v371_v51, %v370_v43  ;;  %v385_v60 = vrot.slane %v384_v52, 2  ;;  %v352_v61 = vrot.slane %v351_v53, 1  ;;  %v359_v62 = vrot.slane %v358_v54, 1 }
  0x5d   : > { %v379_v63 = vadd.f32 %v378_v55, %v377_v47  ;;  %v391_v0 = vadd.f32 %v390_v56, %v389_v48  ;;  %v346_v1 = vadd.f32 %v345_v57, %v344_v49  ;;  %v366_v2 = vrot.slane %v365_v58, 1 }
  0x5e   : > { %v373_v3 = vrot.slane %v372_v59, 1  ;;  %v386_v4 = vadd.f32 %v385_v60, %v384_v52  ;;  %v353_v5 = vadd.f32 %v352_v61, %v351_v53  ;;  %v360_v6 = vadd.f32 %v359_v62, %v358_v54 }
  0x5f   : > { %v380_v7 = vrot.slane %v379_v63, 1  ;;  %v392_v8 = vrot.slane %v391_v0, 2  ;;  %v367_v9 = vadd.f32 %v366_v2, %v365_v58  ;;  %vm408_vm3 = vcmask 1043459  }
  0x60   : > { %v374_v10 = vadd.f32 %v373_v3, %v372_v59  ;;  %v387_v11 = vrot.slane %v386_v4, 1  ;;  %v405_v14 = vsel %vm404_vm1, %v353_v5, %v346_v1  ;;  %vm410_vm4 = vcmask 1044484  }
  0x61   : > { %v381_v12 = vadd.f32 %v380_v7, %v379_v63  ;;  %v393_v13 = vadd.f32 %v392_v8, %v391_v0  ;;  %v407_v16 = vsel %vm406_vm2, %v360_v6, %v405_v14  ;;  %vm412_vm5 = vcmask 1045509  }
  0x62   : > { %v388_v15 = vadd.f32 %v387_v11, %v386_v4  ;;  %v409_v18 = vsel %vm408_vm3, %v367_v9, %v407_v16  ;;  %vm414_vm6 = vcmask 1046534   ;;  %vm416_vm7 = vcmask 1047559  }
  0x63   : > { %v394_v17 = vrot.slane %v393_v13, 1  ;;  %v411_v19 = vsel %vm410_vm4, %v374_v10, %v409_v18 }
  0x64   : > { %v413_v21 = vsel %vm412_vm5, %v381_v12, %v411_v19 }
  0x65   : > { %v395_v20 = vadd.f32 %v394_v17, %v393_v13  ;;  %v415_v22 = vsel %vm414_vm6, %v388_v15, %v413_v21 }
  0x67   : > { %v417_v23 = vsel %vm416_vm7, %v395_v20, %v415_v22 }
  0x68   : > { %419 = vadd.xlane.f32.xlu0 %v417_v23 }
  0xee   : > { %425 = sbr.rel (%p547_p1) target bundleno = 245 (0xf5), region = 40 }
  0xf1   : > { %v420_v24 = vpop.xlane.xlu0 %419 }
  0xf2   : > { %v421_v25 = vmul.f32 0.0009765625, %v420_v24 }
  0xf3   : > { %vm426_vm8 = vcmask 7168  }
  0xf4   : > { %427 = vst.msk [vmem:[%s904_s1] sm:$0xff] %vm426_vm8, %v421_v25 }
  0xf5 PF: > { %p548_p2 = scmp.ne.s32.totalorder %s690_s10, 1 }
  0xf7   : > { %431 = sbr.rel (%p548_p2) target bundleno = 254 (0xfe), region = 44 }
  0xfc   : > { %vm432_vm9 = vcmask 15368  }
  0xfd   : > { %433 = vst.msk [vmem:[%s904_s1] sm:$0xff] %vm432_vm9, %v421_v25 }
  0xfe PF: > { %p549_p3 = scmp.ne.s32.totalorder %s690_s10, 2 }
 0x100   : > { %437 = sbr.rel (%p549_p3) target bundleno = 263 (0x107), region = 48 }
 0x105   : > { %vm438_vm10 = vcmask 23568  }
 0x106   : > { %439 = vst.msk [vmem:[%s904_s1] sm:$0xff] %vm438_vm10, %v421_v25 }
 0x107 PF: > { %p550_p4 = scmp.ne.s32.totalorder %s690_s10, 3 }
 0x109   : > { %443 = sbr.rel (%p550_p4) target bundleno = 272 (0x110), region = 52 }
 0x10e   : > { %vm444_vm11 = vcmask 31768  }
 0x10f   : > { %445 = vst.msk [vmem:[%s904_s1] sm:$0xff] %vm444_vm11, %v421_v25 }
 0x110 PF: > { %s14_s13 = sadd.s32 1, %s702_s13   ;;  %s907_s6 = smov %s678_s7 }
 0x111   : > { %p11_p5 = scmp.ge.s32.totalorder %s14_s13, 10   ;;  %s908_s7 = smov %s682_s8 }
 0x112   : > { %s909_s8 = smov %s784_s27  ;;  %s910_s9 = smov %s694_s11 }
 0x113   : > { %s911_s10 = smov %s698_s12  ;;  %s912_s11 = smov %s915_s14 }
 0x114   : > { %s913_s12 = smov %s919_s15  ;;  %13 = sbr.rel (!%p11_p5) target bundleno = 5 (0x5), region = 93 }
 0x119   :  { %465 = vsyncpa [#allocation4], 1 }
 0x11a   :  { %467 = vsyncpa [#allocation4 + $0x1], 1 }

</bundles_post_ra>
